<compile_context>
chip_gen: v5e
topology: v5e:2x2
jax: 0.10.0
libtpu: 0.0.40
codegen_flags: <defaults>
</compile_context>

<pallas_src>
import jax
import jax.numpy as jnp
from jax.experimental import pallas as pl
from jax.experimental.pallas import tpu as pltpu


def _round_up(n, m):
    return ((n + m - 1) // m) * m


def ffnn_kernel(x_ref, w1_ref, b1_ref, w2_ref, b2_ref, w3_ref, b3_ref, o_ref):
    # Layer 0: Linear(in -> H1) + ReLU   (Dropout p=0.0 -> identity)
    h = jnp.dot(x_ref[...], w1_ref[...], preferred_element_type=jnp.float32)
    h = jnp.maximum(h + b1_ref[...], 0.0)
    # Layer 1: Linear(H1 -> H2) + ReLU   (Dropout p=0.0 -> identity)
    # Cast activations to the weight dtype (bf16 on v6e/v7x path) for the MXU,
    # keep f32 accumulation and f32 bias/ReLU epilogue.
    h = jnp.dot(h.astype(w2_ref.dtype), w2_ref[...],
                preferred_element_type=jnp.float32)
    h = jnp.maximum(h + b2_ref[...], 0.0)
    # Layer 2: Linear(H2 -> H3) + ReLU   (Dropout p=0.0 -> identity)
    h = jnp.dot(h.astype(w3_ref.dtype), w3_ref[...],
                preferred_element_type=jnp.float32)
    h = jnp.maximum(h + b3_ref[...], 0.0)
    o_ref[...] = h.astype(o_ref.dtype)


def ffnn_pre_forward(x, params, *, tile_b=256, use_bf16=False):
    """Fused 3-layer MLP forward.

    x: (B, in_features) float32.
    params: ((W1, b1), (W2, b2), (W3, b3)) with Wi of shape (fan_in, fan_out)
            and bi of shape (1, fan_out).
    Returns: (B, H3) float32.
    """
    (w1, b1), (w2, b2), (w3, b3) = params
    B, F_in = x.shape
    H1, H2, H3 = w1.shape[1], w2.shape[1], w3.shape[1]

    # --- Lane-pad hidden/output widths to multiples of 128 (exact under ReLU).
    H1p = _round_up(H1, 128)
    H2p = _round_up(H2, 128)
    H3p = _round_up(H3, 128)

    def pad2(a, rows, cols):
        return jnp.pad(a, ((0, rows - a.shape[0]), (0, cols - a.shape[1])))

    w1p = pad2(w1, F_in, H1p)
    w2p = pad2(w2, H1p, H2p)
    w3p = pad2(w3, H2p, H3p)
    b1p = pad2(b1, 1, H1p)   # padded bias entries are zero -> ReLU keeps them 0
    b2p = pad2(b2, 1, H2p)
    b3p = pad2(b3, 1, H3p)

    xk = x
    if use_bf16:
        # bf16 MXU inputs (v6e/v7x fast path); biases stay f32 for the epilogue.
        xk = xk.astype(jnp.bfloat16)
        w1p = w1p.astype(jnp.bfloat16)
        w2p = w2p.astype(jnp.bfloat16)
        w3p = w3p.astype(jnp.bfloat16)

    # --- Batch tiling: big tiles (default 256 rows); small batches run as one
    #     block. Pad B up to the tile multiple instead of asserting divisibility.
    sub = 16 if use_bf16 else 8           # bf16 packs 16 rows per sublane tile
    b_tile = _round_up(min(tile_b, _round_up(B, sub)), sub)
    b_pad = _round_up(B, b_tile)
    if b_pad != B:
        xk = jnp.pad(xk, ((0, b_pad - B), (0, 0)))

    grid = (b_pad // b_tile,)

    def const_map(i):
        return (0, 0)

    flops = 2 * b_pad * (F_in * H1p + H1p * H2p + H2p * H3p)
    bytes_accessed = (
        xk.size * xk.dtype.itemsize
        + sum(a.size * a.dtype.itemsize
              for a in (w1p, b1p, w2p, b2p, w3p, b3p))
        + b_pad * H3p * 4
    )

    out = pl.pallas_call(
        ffnn_kernel,
        out_shape=jax.ShapeDtypeStruct((b_pad, H3p), jnp.float32),
        grid_spec=pltpu.PrefetchScalarGridSpec(
            num_scalar_prefetch=0,
            grid=grid,
            in_specs=[
                pl.BlockSpec((b_tile, F_in), lambda i: (i, 0)),  # x tile
                pl.BlockSpec((F_in, H1p), const_map),            # W1 (resident)
                pl.BlockSpec((1, H1p), const_map),               # b1
                pl.BlockSpec((H1p, H2p), const_map),             # W2
                pl.BlockSpec((1, H2p), const_map),               # b2
                pl.BlockSpec((H2p, H3p), const_map),             # W3
                pl.BlockSpec((1, H3p), const_map),               # b3
            ],
            out_specs=pl.BlockSpec((b_tile, H3p), lambda i: (i, 0)),
        ),
        compiler_params=pltpu.CompilerParams(
            dimension_semantics=("parallel",),   # megacore-shardable on v7x
        ),
        cost_estimate=pl.CostEstimate(
            flops=flops, transcendentals=0, bytes_accessed=bytes_accessed),
    )(xk, w1p, b1p, w2p, b2p, w3p, b3p)

    return out[:B, :H3]


def init_linear(key, fan_in, fan_out):
    """Mimic torch.nn.Linear default init: U(-1/sqrt(fan_in), 1/sqrt(fan_in))."""
    kw, kb = jax.random.split(key)
    bound = 1.0 / jnp.sqrt(float(fan_in))
    w = jax.random.uniform(kw, (fan_in, fan_out), jnp.float32, -bound, bound)
    b = jax.random.uniform(kb, (1, fan_out), jnp.float32, -bound, bound)
    return w, b


if __name__ == "__main__":
    key = jax.random.PRNGKey(0)
    k_x, k1, k2, k3 = jax.random.split(key, 4)

    B = 16                     # batch
    F_in = 64                  # in_features
    H1, H2, H3 = 128, 64, 32   # layer widths from the synthetic trial

    x = jax.random.normal(k_x, (B, F_in), jnp.float32)
    params = (
        init_linear(k1, F_in, H1),
        init_linear(k2, H1, H2),
        init_linear(k3, H2, H3),
    )

    # Reference in plain JAX (Linear -> ReLU x3; dropout p=0.0 is identity).
    ref = x
    for (w, b) in params:
        ref = jnp.maximum(ref @ w + b, 0.0)

    # f32 path (exact): strict check.
    out = jax.block_until_ready(ffnn_pre_forward(x, params))
    assert out.shape == (B, H3)
    assert jnp.allclose(out, ref, atol=1e-5, rtol=1e-5)

    # bf16 MXU-input path (v6e/v7x perf path): f32 accumulation, loose check.
    out_bf16 = jax.block_until_ready(ffnn_pre_forward(x, params, use_bf16=True))
    assert out_bf16.shape == (B, H3)
    assert jnp.allclose(out_bf16, ref, atol=5e-2, rtol=5e-2)

    print("KERNEL_OK")
</pallas_src>

<mosaic_0001>
module attributes {stable_mosaic.version = 11 : i64} {
  func.func @ffnn_kernel(%arg0: i32, %arg1: memref<16x64xf32, #tpu.memory_space<vmem>>, %arg2: memref<64x128xf32, #tpu.memory_space<vmem>>, %arg3: memref<1x128xf32, #tpu.memory_space<vmem>>, %arg4: memref<128x128xf32, #tpu.memory_space<vmem>>, %arg5: memref<1x128xf32, #tpu.memory_space<vmem>>, %arg6: memref<128x128xf32, #tpu.memory_space<vmem>>, %arg7: memref<1x128xf32, #tpu.memory_space<vmem>>, %arg8: memref<16x128xf32, #tpu.memory_space<vmem>>) attributes {dimension_semantics = [#tpu.dimension_semantics<parallel>], iteration_bounds = array<i64: 1>, scalar_prefetch = 0 : i64, scratch_operands = 0 : i64, tpu.core_type = #tpu.core_type<tc>, window_params = [{transform_indices = @transform_0, window_bounds = array<i64: 16, 64>}, {pipeline_mode = #tpu.pipeline_mode<synchronous>, transform_indices = @transform_1, window_bounds = array<i64: 64, 128>}, {pipeline_mode = #tpu.pipeline_mode<synchronous>, transform_indices = @transform_2, window_bounds = array<i64: 1, 128>}, {pipeline_mode = #tpu.pipeline_mode<synchronous>, transform_indices = @transform_3, window_bounds = array<i64: 128, 128>}, {pipeline_mode = #tpu.pipeline_mode<synchronous>, transform_indices = @transform_4, window_bounds = array<i64: 1, 128>}, {pipeline_mode = #tpu.pipeline_mode<synchronous>, transform_indices = @transform_5, window_bounds = array<i64: 128, 128>}, {pipeline_mode = #tpu.pipeline_mode<synchronous>, transform_indices = @transform_6, window_bounds = array<i64: 1, 128>}, {transform_indices = @transform_7, window_bounds = array<i64: 16, 128>}]} {
    %c0 = arith.constant 0 : index
    %c0_0 = arith.constant 0 : index
    %0 = vector.load %arg1[%c0, %c0_0] : memref<16x64xf32, #tpu.memory_space<vmem>>, vector<16x64xf32>
    %c0_1 = arith.constant 0 : index
    %c0_2 = arith.constant 0 : index
    %1 = vector.load %arg2[%c0_1, %c0_2] : memref<64x128xf32, #tpu.memory_space<vmem>>, vector<64x128xf32>
    %cst = arith.constant dense<0.000000e+00> : vector<16x128xf32>
    %2 = tpu.matmul %0, %1, %cst {dimension_numbers = #tpu.dot_dimension_numbers<[1], [0], [0], [1], [0, 0, 1, 1], [], []>} : vector<16x64xf32>, vector<64x128xf32>, vector<16x128xf32> -> vector<16x128xf32>
    %c0_3 = arith.constant 0 : index
    %c0_4 = arith.constant 0 : index
    %3 = vector.load %arg3[%c0_3, %c0_4] : memref<1x128xf32, #tpu.memory_space<vmem>>, vector<1x128xf32>
    %4 = vector.broadcast %3 : vector<1x128xf32> to vector<16x128xf32>
    %5 = arith.addf %2, %4 : vector<16x128xf32>
    %cst_5 = arith.constant 0.000000e+00 : f32
    %6 = vector.broadcast %cst_5 : f32 to vector<16x128xf32>
    %7 = arith.maximumf %5, %6 : vector<16x128xf32>
    %c0_6 = arith.constant 0 : index
    %c0_7 = arith.constant 0 : index
    %8 = vector.load %arg4[%c0_6, %c0_7] : memref<128x128xf32, #tpu.memory_space<vmem>>, vector<128x128xf32>
    %cst_8 = arith.constant dense<0.000000e+00> : vector<16x128xf32>
    %9 = tpu.matmul %7, %8, %cst_8 {dimension_numbers = #tpu.dot_dimension_numbers<[1], [0], [0], [1], [0, 0, 1, 1], [], []>} : vector<16x128xf32>, vector<128x128xf32>, vector<16x128xf32> -> vector<16x128xf32>
    %c0_9 = arith.constant 0 : index
    %c0_10 = arith.constant 0 : index
    %10 = vector.load %arg5[%c0_9, %c0_10] : memref<1x128xf32, #tpu.memory_space<vmem>>, vector<1x128xf32>
    %11 = vector.broadcast %10 : vector<1x128xf32> to vector<16x128xf32>
    %12 = arith.addf %9, %11 : vector<16x128xf32>
    %cst_11 = arith.constant 0.000000e+00 : f32
    %13 = vector.broadcast %cst_11 : f32 to vector<16x128xf32>
    %14 = arith.maximumf %12, %13 : vector<16x128xf32>
    %c0_12 = arith.constant 0 : index
    %c0_13 = arith.constant 0 : index
    %15 = vector.load %arg6[%c0_12, %c0_13] : memref<128x128xf32, #tpu.memory_space<vmem>>, vector<128x128xf32>
    %cst_14 = arith.constant dense<0.000000e+00> : vector<16x128xf32>
    %16 = tpu.matmul %14, %15, %cst_14 {dimension_numbers = #tpu.dot_dimension_numbers<[1], [0], [0], [1], [0, 0, 1, 1], [], []>} : vector<16x128xf32>, vector<128x128xf32>, vector<16x128xf32> -> vector<16x128xf32>
    %c0_15 = arith.constant 0 : index
    %c0_16 = arith.constant 0 : index
    %17 = vector.load %arg7[%c0_15, %c0_16] : memref<1x128xf32, #tpu.memory_space<vmem>>, vector<1x128xf32>
    %18 = vector.broadcast %17 : vector<1x128xf32> to vector<16x128xf32>
    %19 = arith.addf %16, %18 : vector<16x128xf32>
    %cst_17 = arith.constant 0.000000e+00 : f32
    %20 = vector.broadcast %cst_17 : f32 to vector<16x128xf32>
    %21 = arith.maximumf %19, %20 : vector<16x128xf32>
    %c0_18 = arith.constant 0 : index
    %c0_19 = arith.constant 0 : index
    %22 = vector.load %arg8[%c0_18, %c0_19] : memref<16x128xf32, #tpu.memory_space<vmem>>, vector<16x128xf32>
    tpu.vector_store %arg8[%c0_18, %c0_19], %21 {strides = array<i32>} : memref<16x128xf32, #tpu.memory_space<vmem>>, vector<16x128xf32>,
    return
  }
  func.func @transform_0(%arg0: i32) -> (i32, i32) {
    %c0_i32 = arith.constant 0 : i32
    %c0_i32_0 = arith.constant 0 : i32
    return %arg0, %c0_i32 : i32, i32
  }
  func.func @transform_1(%arg0: i32) -> (i32, i32) {
    %c0_i32 = arith.constant 0 : i32
    %c0_i32_0 = arith.constant 0 : i32
    %c0_i32_1 = arith.constant 0 : i32
    return %c0_i32, %c0_i32_0 : i32, i32
  }
  func.func @transform_2(%arg0: i32) -> (i32, i32) {
    %c0_i32 = arith.constant 0 : i32
    %c0_i32_0 = arith.constant 0 : i32
    %c0_i32_1 = arith.constant 0 : i32
    return %c0_i32, %c0_i32_0 : i32, i32
  }
  func.func @transform_3(%arg0: i32) -> (i32, i32) {
    %c0_i32 = arith.constant 0 : i32
    %c0_i32_0 = arith.constant 0 : i32
    %c0_i32_1 = arith.constant 0 : i32
    return %c0_i32, %c0_i32_0 : i32, i32
  }
  func.func @transform_4(%arg0: i32) -> (i32, i32) {
    %c0_i32 = arith.constant 0 : i32
    %c0_i32_0 = arith.constant 0 : i32
    %c0_i32_1 = arith.constant 0 : i32
    return %c0_i32, %c0_i32_0 : i32, i32
  }
  func.func @transform_5(%arg0: i32) -> (i32, i32) {
    %c0_i32 = arith.constant 0 : i32
    %c0_i32_0 = arith.constant 0 : i32
    %c0_i32_1 = arith.constant 0 : i32
    return %c0_i32, %c0_i32_0 : i32, i32
  }
  func.func @transform_6(%arg0: i32) -> (i32, i32) {
    %c0_i32 = arith.constant 0 : i32
    %c0_i32_0 = arith.constant 0 : i32
    %c0_i32_1 = arith.constant 0 : i32
    return %c0_i32, %c0_i32_0 : i32, i32
  }
  func.func @transform_7(%arg0: i32) -> (i32, i32) {
    %c0_i32 = arith.constant 0 : i32
    %c0_i32_0 = arith.constant 0 : i32
    return %arg0, %c0_i32 : i32, i32
  }
}

</mosaic_0001>

<bundles_post_ra>
// kernel: tpu_custom_call.1
= control target key start
LH: loop header
LB: loop body
LE: loop exit
PB: predicated region body
PF: predicated region fallthrough
CT: control target
= control target key end

     0   :  { %12 = vsyncpa [#allocation3], 0  ;;  %s493_s0 = inlined_call_operand.hbm [shape: f32[16,64], index: 0, kind: input, shape index: {}]   ;;  %s494_s1 = inlined_call_operand.hbm [shape: f32[64,128], index: 1, kind: input, shape index: {}]   ;;  %s495_s2 = inlined_call_operand.vmem [shape: f32[1,128], index: 2, kind: input, shape index: {}]   ;;  %s496_s3 = inlined_call_operand.hbm [shape: f32[128,128], index: 3, kind: input, shape index: {}]   ;;  %s497_s4 = inlined_call_operand.vmem [shape: f32[1,128], index: 4, kind: input, shape index: {}]   ;;  %s498_s5 = inlined_call_operand.hbm [shape: f32[128,128], index: 5, kind: input, shape index: {}]   ;;  %s499_s6 = inlined_call_operand.vmem [shape: f32[1,128], index: 6, kind: input, shape index: {}]   ;;  %s500_s7 = inlined_call_operand.hbm [shape: f32[16,128], index: 7, kind: output, shape index: {}]  }
   0x1   :  { %13 = vsyncpa [#allocation6], 0 }
   0x2   :  { %14 = vsyncpa [#allocation9], 0 }
   0x3   :  { %15 = vsyncpa [#allocation4], 0  ;;  %s33_s26 = sshll.u32 %s494_s1, 4  ;;  %s405_s27 = smov [#allocation5]   ;;  %s34_s26 = int_to_ptr.hbm [resolvable:$true] %s33_s26 }
   0x4   :  { %s35_s28 = sshll.u32 %s405_s27, 4  ;;  %s20_s8 = sshll.u32 %s493_s0, 4  ;;  %s36_s28 = int_to_ptr.vmem [resolvable:$true] %s35_s28  ;;  %s21_s8 = int_to_ptr.hbm [resolvable:$true] %s20_s8 }
   0x5   :  { %s406_s9 = smov 128   ;;  %s407_s10 = smov 8  }
   0x6   :  { %41 = dma.hbm_to_vmem [thread:$0]  %s34_s26, 1024, %s36_s28, [#allocation6], %s406_s9, %s406_s9, %s407_s10  }
   0x7   :  { %s408_s11 = smov [#allocation2]   ;;  %s48_s1 = sshll.u32 %s496_s3, 4  ;;  %s49_s1 = int_to_ptr.hbm [resolvable:$true] %s48_s1 }
   0x8   :  { %s22_s12 = sshll.u32 %s408_s11, 4  ;;  %s63_s16 = sshll.u32 %s498_s5, 4  ;;  %s23_s12 = int_to_ptr.vmem [resolvable:$true] %s22_s12  ;;  %s64_s16 = int_to_ptr.hbm [resolvable:$true] %s63_s16 }
   0x9   :  { %28 = dma.hbm_to_vmem [thread:$0]  %s21_s8, 256, %s23_s12, [#allocation3], %s406_s9, %s406_s9, %s407_s10  }
   0xa   :  { %s409_s17 = smov [#allocation7]   ;;  %s410_s19 = smov [#allocation8]  }
   0xb   :  { %s50_s18 = sshll.u32 %s409_s17, 4  ;;  %s65_s3 = sshll.u32 %s410_s19, 4  ;;  %s51_s18 = int_to_ptr.vmem [resolvable:$true] %s50_s18  ;;  %s66_s3 = int_to_ptr.vmem [resolvable:$true] %s65_s3 }
   0xc   :  { %56 = dma.hbm_to_vmem [thread:$0]  %s49_s1, 2048, %s51_s18, [#allocation6], %s406_s9, %s406_s9, %s407_s10  }
   0xd   :  { %71 = dma.hbm_to_vmem [thread:$0]  %s64_s16, 2048, %s66_s3, [#allocation9], %s406_s9, %s406_s9, %s407_s10  }
   0xe   :  { %397 = dma.done.wait [#allocation3], 256  }
   0xf   :  { %398 = vsyncadd [#allocation3], 4294967040 }
  0x10   :  { %399 = dma.done.wait [#allocation6], 3072  }
  0x11   :  { %400 = vsyncadd [#allocation6], 4294964224 }
  0x12   :  { %401 = dma.done.wait [#allocation9], 2048  }
  0x13   :  { %402 = vsyncadd [#allocation9], 4294965248  ;;  %v99_v0 = vld [vmem:[#allocation5 + $0x38] sm:$0xff]  ;;  %v98_v1 = vld [vmem:[#allocation5 + $0x30] sm:$0xff]  ;;  %vm104_vm0 = vcmask 523264   ;;  %s411_s24 = smov [#allocation10]  }
  0x14   :  { %119 = vmatpush.msra.mxu0 %v99_v0  ;;  %v97_v2 = vld [vmem:[#allocation5 + $0x28] sm:$0xff]  ;;  %v151_v3 = vld [vmem:[#allocation7 + $0x78] sm:$0xff]  ;;  %v150_v4 = vld [vmem:[#allocation7 + $0x70] sm:$0xff]  ;;  %s232_s25 = sshll.u32 %s411_s24, 4  ;;  %s234_s27 = sshll.u32 %s500_s7, 4  ;;  %s233_s25 = int_to_ptr.vmem [resolvable:$true] %s232_s25  ;;  %s235_s27 = int_to_ptr.hbm [resolvable:$true] %s234_s27 }
  0x15   :  { %v96_v5 = vld [vmem:[#allocation5 + $0x20] sm:$0xff]  ;;  %156 = vmatpush.msra.mxu1 %v151_v3  ;;  %251 = vmatpush.msra.mxu3 %v151_v3  ;;  %v149_v6 = vld [vmem:[#allocation7 + $0x68] sm:$0xff]  ;;  %v95_v7 = vld [vmem:[#allocation5 + $0x18] sm:$0xff] }
  0x16   :  { %120 = vmatpush.msra.mxu0 %v98_v1  ;;  %v148_v8 = vld [vmem:[#allocation7 + $0x60] sm:$0xff]  ;;  %v94_v9 = vld [vmem:[#allocation5 + $0x10] sm:$0xff]  ;;  %v147_v10 = vld [vmem:[#allocation7 + $0x58] sm:$0xff] }
  0x17   :  { %157 = vmatpush.msra.mxu1 %v150_v4  ;;  %252 = vmatpush.msra.mxu3 %v150_v4  ;;  %v93_v11 = vld [vmem:[#allocation5 + $0x8] sm:$0xff]  ;;  %v146_v12 = vld [vmem:[#allocation7 + $0x50] sm:$0xff]  ;;  %v92_v13 = vld [vmem:[#allocation5] sm:$0xff] }
  0x18   :  { %121 = vmatpush.msra.mxu0 %v97_v2  ;;  %v90_v14 = vld [vmem:[#allocation2] sm:$0xff]  ;;  %v145_v15 = vld [vmem:[#allocation7 + $0x48] sm:$0xff]  ;;  %v144_v16 = vld [vmem:[#allocation7 + $0x40] sm:$0xff] }
  0x19   :  { %158 = vmatpush.msra.mxu1 %v149_v6  ;;  %253 = vmatpush.msra.mxu3 %v149_v6  ;;  %v143_v17 = vld [vmem:[#allocation7 + $0x38] sm:$0xff]  ;;  %v142_v18 = vld [vmem:[#allocation7 + $0x30] sm:$0xff]  ;;  %v141_v20 = vld [vmem:[#allocation7 + $0x28] sm:$0xff] }
  0x1a   :  { %122 = vmatpush.msra.mxu0 %v96_v5  ;;  %v91_v19 = vld [vmem:[#allocation2 + $0x8] sm:$0xff]  ;;  %v140_v21 = vld [vmem:[#allocation7 + $0x20] sm:$0xff]  ;;  %v138_v23 = vld [vmem:[#allocation7 + $0x10] sm:$0xff] }
  0x1b   :  { %159 = vmatpush.msra.mxu1 %v148_v8  ;;  %254 = vmatpush.msra.mxu3 %v148_v8  ;;  %v139_v22 = vld [vmem:[#allocation7 + $0x18] sm:$0xff]  ;;  %v137_v24 = vld [vmem:[#allocation7 + $0x8] sm:$0xff]  ;;  %v136_v25 = vld [vmem:[#allocation7] sm:$0xff] }
  0x1c   :  { %123 = vmatpush.msra.mxu0 %v95_v7  ;;  %v196_v26 = vld [vmem:[#allocation8 + $0x78] sm:$0xff]  ;;  %v195_v27 = vld [vmem:[#allocation8 + $0x70] sm:$0xff]  ;;  %v194_v28 = vld [vmem:[#allocation8 + $0x68] sm:$0xff] }
  0x1d   :  { %160 = vmatpush.msra.mxu1 %v147_v10  ;;  %255 = vmatpush.msra.mxu3 %v147_v10  ;;  %v193_v29 = vld [vmem:[#allocation8 + $0x60] sm:$0xff]  ;;  %v192_v30 = vld [vmem:[#allocation8 + $0x58] sm:$0xff]  ;;  %v191_v31 = vld [vmem:[#allocation8 + $0x50] sm:$0xff] }
  0x1e   :  { %124 = vmatpush.msra.mxu0 %v94_v9  ;;  %201 = vmatpush.msra.mxu2 %v196_v26  ;;  %v190_v32 = vld [vmem:[#allocation8 + $0x48] sm:$0xff]  ;;  %v189_v33 = vld [vmem:[#allocation8 + $0x40] sm:$0xff]  ;;  %v188_v34 = vld [vmem:[#allocation8 + $0x38] sm:$0xff] }
  0x1f   :  { %161 = vmatpush.msra.mxu1 %v146_v12  ;;  %256 = vmatpush.msra.mxu3 %v146_v12  ;;  %v274_v35 = vld [vmem:[%s495_s2] ss:$0 sm:$0xff]  ;;  %v186_v37 = vld [vmem:[#allocation8 + $0x28] sm:$0xff]  ;;  %v185_v40 = vld [vmem:[#allocation8 + $0x20] sm:$0xff] }
  0x20   :  { %125 = vmatpush.msra.mxu0 %v93_v11  ;;  %202 = vmatpush.msra.mxu2 %v195_v27  ;;  %v187_v36 = vld [vmem:[#allocation8 + $0x30] sm:$0xff]  ;;  %v184_v42 = vld [vmem:[#allocation8 + $0x18] sm:$0xff]  ;;  %v182_v47 = vld [vmem:[#allocation8 + $0x8] sm:$0xff] }
  0x21   :  { %162 = vmatpush.msra.mxu1 %v145_v15  ;;  %257 = vmatpush.msra.mxu3 %v145_v15  ;;  %v183_v46 = vld [vmem:[#allocation8 + $0x10] sm:$0xff]  ;;  %v181_v48 = vld [vmem:[#allocation8] sm:$0xff] }
  0x22   :  { %126 = vmatpush.msra.mxu0 %v92_v13  ;;  %203 = vmatpush.msra.mxu2 %v194_v28  ;;  %v275_v49 = vld [vmem:[%s497_s4] ss:$0 sm:$0xff] }
  0x23   :  { %249 = vmatmul.msk.f32.vlgmr.msra.gmra.mxu0 %vm104_vm0, %v90_v14  ;;  %163 = vmatpush.msra.mxu1 %v144_v16  ;;  %v276_v56 = vld [vmem:[%s499_s6] ss:$0 sm:$0xff] }
  0x24   :  { %258 = vmatpush.msra.mxu3 %v144_v16  ;;  %204 = vmatpush.msra.mxu2 %v193_v29 }
  0x25   :  { %164 = vmatpush.msra.mxu1 %v143_v17 }
  0x26   :  { %259 = vmatpush.msra.mxu3 %v143_v17  ;;  %205 = vmatpush.msra.mxu2 %v192_v30 }
  0x27   :  { %165 = vmatpush.msra.mxu1 %v142_v18 }
  0x28   :  { %260 = vmatpush.msra.mxu3 %v142_v18  ;;  %206 = vmatpush.msra.mxu2 %v191_v31 }
  0x29   :  { %166 = vmatpush.msra.mxu1 %v141_v20 }
  0x2a   :  { %261 = vmatpush.msra.mxu3 %v141_v20  ;;  %207 = vmatpush.msra.mxu2 %v190_v32 }
  0x2b   :  { %250 = vmatmul.msk.f32.gmra.mxu0 %vm104_vm0, %v91_v19  ;;  %167 = vmatpush.msra.mxu1 %v140_v21 }
  0x2c   :  { %262 = vmatpush.msra.mxu3 %v140_v21  ;;  %208 = vmatpush.msra.mxu2 %v189_v33 }
  0x2d   :  { %168 = vmatpush.msra.mxu1 %v139_v22 }
  0x2e   :  { %263 = vmatpush.msra.mxu3 %v139_v22  ;;  %209 = vmatpush.msra.mxu2 %v188_v34 }
  0x2f   :  { %169 = vmatpush.msra.mxu1 %v138_v23 }
  0x30   :  { %264 = vmatpush.msra.mxu3 %v138_v23  ;;  %210 = vmatpush.msra.mxu2 %v187_v36 }
  0x31   :  { %170 = vmatpush.msra.mxu1 %v137_v24 }
  0x32   :  { %265 = vmatpush.msra.mxu3 %v137_v24  ;;  %211 = vmatpush.msra.mxu2 %v186_v37 }
  0x33   :  { %171 = vmatpush.msra.mxu1 %v136_v25 }
  0x34   :  { %266 = vmatpush.msra.mxu3 %v136_v25  ;;  %212 = vmatpush.msra.mxu2 %v185_v40 }
  0x36   :  { %213 = vmatpush.msra.mxu2 %v184_v42 }
  0x38   :  { %214 = vmatpush.msra.mxu2 %v183_v46 }
  0x3a   :  { %215 = vmatpush.msra.mxu2 %v182_v47 }
  0x3c   :  { %216 = vmatpush.msra.mxu2 %v181_v48 }
  0xa0   :  { %v128_v38 = vpop.f32.mrf.mxu0 }
  0xa1   :  { %v129_v39 = vadd.f32 %v274_v35, %v128_v38 }
  0xa3   :  { %v134_v41 = vmax.f32 %v129_v39, 0.0 }
  0xa5   :  { %172 = vmatmul.f32.vlgmr.msra.gmra.mxu1 %v134_v41 }
  0xa8   :  { %v131_v43 = vpop.f32.mrf.mxu0 }
  0xa9   :  { %v132_v44 = vadd.f32 %v274_v35, %v131_v43 }
  0xab   :  { %v135_v45 = vmax.f32 %v132_v44, 0.0 }
  0xad   :  { %175 = vmatmul.f32.vlgmr.msra.gmra.mxu3 %v135_v45 }
 0x122   :  { %v173_v50 = vpop.f32.mrf.mxu1 }
 0x123   :  { %v174_v51 = vadd.f32 %v275_v49, %v173_v50 }
 0x125   :  { %v179_v52 = vmax.f32 %v174_v51, 0.0 }
 0x127   :  { %217 = vmatmul.f32.vlgmr.msra.gmra.mxu2 %v179_v52 }
 0x130   :  { %v176_v53 = vpop.f32.mrf.mxu3 }
 0x131   :  { %v177_v54 = vadd.f32 %v275_v49, %v176_v53 }
 0x133   :  { %v180_v55 = vmax.f32 %v177_v54, 0.0 }
 0x135   :  { %220 = vmatmul.f32.gmra.mxu2 %v180_v55 }
 0x1aa   :  { %v218_v57 = vpop.f32.mrf.mxu2 }
 0x1ab   :  { %v219_v58 = vadd.f32 %v276_v56, %v218_v57 }
 0x1ad   :  { %v224_v59 = vmax.f32 %v219_v58, 0.0 }
 0x1af   :  { %226 = vst [vmem:[#allocation10] sm:$0xff] %v224_v59 }
 0x1b8   :  { %v221_v60 = vpop.f32.mrf.mxu2 }
 0x1b9   :  { %v222_v61 = vadd.f32 %v276_v56, %v221_v60 }
 0x1bb   :  { %v225_v62 = vmax.f32 %v222_v61, 0.0 }
 0x1bd   :  { %227 = vst [vmem:[#allocation10 + $0x8] sm:$0xff] %v225_v62 }
 0x1be   :  { %240 = dma.vmem_to_hbm [thread:$0]  %s233_s25, 256, %s235_s27, [#allocation4], %s406_s9, %s406_s9, %s407_s10  }
 0x1bf   :  { %403 = dma.done.wait [#allocation4], 256  }
 0x1c0   :  { %404 = vsyncadd [#allocation4], 4294967040 }
 0x1c1   :  { %245 = vsyncpa [#allocation3], 1 }
 0x1c2   :  { %246 = vsyncpa [#allocation6], 1 }
 0x1c3   :  { %247 = vsyncpa [#allocation9], 1 }
 0x1c4   :  { %248 = vsyncpa [#allocation4], 1 }

</bundles_post_ra>
